<compile_context>
chip_gen: v6e
topology: v6e:2x2x1
jax: 0.10.0
libtpu: 0.0.40
codegen_flags: <defaults>
</compile_context>

<pallas_src>
import math
import jax
import jax.numpy as jnp
from jax.experimental import pallas as pl
from jax.experimental.pallas import tpu as pltpu


def _attention_head_kernel(x_ref, wq_ref, wk_ref, wv_ref, o_ref):
    # Per grid step (one batch element):
    #   x_ref: (T, C)   wq/wk/wv_ref: (C, H)   o_ref: (T, H)   -- all f32
    x = x_ref[...]

    # Three small projections on the MXU, f32 accumulation.
    q = jnp.dot(x, wq_ref[...], preferred_element_type=jnp.float32)  # scaled q
    k = jnp.dot(x, wk_ref[...], preferred_element_type=jnp.float32)
    v = jnp.dot(x, wv_ref[...], preferred_element_type=jnp.float32)

    # scores[i, j] = sum_h q[i, h] * k[j, h]   (NT contraction, no explicit k.T)
    scores = jax.lax.dot_general(
        q, k, dimension_numbers=(((1,), (1,)), ((), ())),
        preferred_element_type=jnp.float32)                          # (T, T)

    # Causal mask (== masked_fill(tril == 0, -inf)).
    T = scores.shape[0]
    row = jax.lax.broadcasted_iota(jnp.int32, (T, T), 0)
    col = jax.lax.broadcasted_iota(jnp.int32, (T, T), 1)
    scores = jnp.where(col <= row, scores, -jnp.inf)

    # Numerically-stable softmax, exact f32 (diagonal guarantees a finite max;
    # if reused with arbitrary masks, floor `m` to avoid NaN on empty rows).
    m = jnp.max(scores, axis=-1, keepdims=True)
    p = jnp.exp(scores - m)
    p = p / jnp.sum(p, axis=-1, keepdims=True)

    # TODO(synk): dropout is identity here (eval mode / p=0); stochastic
    # dropout would use pltpu.prng_seed + pltpu.prng_random_bits.

    # out[i, h] = sum_j p[i, j] * v[j, h]
    o_ref[...] = jnp.dot(p, v, preferred_element_type=jnp.float32).astype(o_ref.dtype)


def attention_head(x, wq, wk, wv):
    """x: (B, T, C) float32; wq/wk/wv: (C, H) (already y = x @ W layout).

    Returns (B, T, H), matching AttentionHead.forward with dropout p=0.
    """
    B, T, C = x.shape
    H = wq.shape[1]

    # Fold the 1/sqrt(head_size) attention scale into the q projection
    # (f32 wrapper math; removes the per-element scale from the kernel).
    wq_scaled = wq * (1.0 / math.sqrt(H))

    x2d = x.reshape(B * T, C)

    out2d = pl.pallas_call(
        _attention_head_kernel,
        out_shape=jax.ShapeDtypeStruct((B * T, H), x.dtype),
        grid_spec=pltpu.PrefetchScalarGridSpec(
            num_scalar_prefetch=0,
            grid=(B,),  # one batch element per step; shards across TCs on v7x
            in_specs=[
                pl.BlockSpec((T, C), lambda b: (b, 0)),
                pl.BlockSpec((C, H), lambda b: (0, 0)),   # resident weights
                pl.BlockSpec((C, H), lambda b: (0, 0)),
                pl.BlockSpec((C, H), lambda b: (0, 0)),
            ],
            out_specs=pl.BlockSpec((T, H), lambda b: (b, 0)),
        ),
        compiler_params=pltpu.CompilerParams(
            dimension_semantics=("parallel",)),
    )(x2d, wq_scaled, wk, wv)

    return out2d.reshape(B, T, H)


def attention_head_ref(x, wq, wk, wv):
    """Pure-JAX f32 reference matching the PyTorch forward (dropout p=0)."""
    q = x @ wq
    k = x @ wk
    v = x @ wv
    H = wq.shape[1]
    scores = (q @ jnp.swapaxes(k, -1, -2)) / math.sqrt(H)
    T = x.shape[1]
    mask = jnp.tril(jnp.ones((T, T), dtype=bool))
    scores = jnp.where(mask, scores, -jnp.inf)
    p = jax.nn.softmax(scores, axis=-1)
    return p @ v


if __name__ == "__main__":
    # Module hyperparameters: n_embedding=32, head_size=16, block_size=8 (=T),
    # dropout=0.0.
    B, T, C, H = 2, 8, 32, 16

    key = jax.random.PRNGKey(0)
    kx, kq, kk, kv = jax.random.split(key, 4)

    x = jax.random.normal(kx, (B, T, C), dtype=jnp.float32)
    # Deterministic weight init (torch.nn.Linear-style uniform bound).
    bound = 1.0 / math.sqrt(C)
    wq = jax.random.uniform(kq, (C, H), jnp.float32, -bound, bound)
    wk = jax.random.uniform(kk, (C, H), jnp.float32, -bound, bound)
    wv = jax.random.uniform(kv, (C, H), jnp.float32, -bound, bound)

    out = attention_head(x, wq, wk, wv)
    out = jax.block_until_ready(out)

    ref = attention_head_ref(x, wq, wk, wv)
    assert out.shape == (B, T, H)
    # Pure f32 path + exact softmax division: tight tolerance.
    assert jnp.allclose(out, ref, atol=1e-4, rtol=1e-4), "mismatch vs reference"

    print("KERNEL_OK")
</pallas_src>

<mosaic_0001>
module attributes {stable_mosaic.version = 11 : i64} {
  func.func @_attention_head_kernel(%arg0: i32, %arg1: memref<8x32xf32, #tpu.memory_space<vmem>>, %arg2: memref<32x16xf32, #tpu.memory_space<vmem>>, %arg3: memref<32x16xf32, #tpu.memory_space<vmem>>, %arg4: memref<32x16xf32, #tpu.memory_space<vmem>>, %arg5: memref<8x16xf32, #tpu.memory_space<vmem>>) attributes {dimension_semantics = [#tpu.dimension_semantics<parallel>], iteration_bounds = array<i64: 2>, scalar_prefetch = 0 : i64, scratch_operands = 0 : i64, tpu.core_type = #tpu.core_type<tc>, window_params = [{transform_indices = @transform_0, window_bounds = array<i64: 8, 32>}, {pipeline_mode = #tpu.pipeline_mode<synchronous>, transform_indices = @transform_1, window_bounds = array<i64: 32, 16>}, {pipeline_mode = #tpu.pipeline_mode<synchronous>, transform_indices = @transform_2, window_bounds = array<i64: 32, 16>}, {pipeline_mode = #tpu.pipeline_mode<synchronous>, transform_indices = @transform_3, window_bounds = array<i64: 32, 16>}, {transform_indices = @transform_4, window_bounds = array<i64: 8, 16>}]} {
    %c0 = arith.constant 0 : index
    %c0_0 = arith.constant 0 : index
    %0 = vector.load %arg1[%c0, %c0_0] : memref<8x32xf32, #tpu.memory_space<vmem>>, vector<8x32xf32>
    %c0_1 = arith.constant 0 : index
    %c0_2 = arith.constant 0 : index
    %1 = vector.load %arg2[%c0_1, %c0_2] : memref<32x16xf32, #tpu.memory_space<vmem>>, vector<32x16xf32>
    %cst = arith.constant dense<0.000000e+00> : vector<8x16xf32>
    %2 = tpu.matmul %0, %1, %cst {dimension_numbers = #tpu.dot_dimension_numbers<[1], [0], [0], [1], [0, 0, 1, 1], [], []>} : vector<8x32xf32>, vector<32x16xf32>, vector<8x16xf32> -> vector<8x16xf32>
    %c0_3 = arith.constant 0 : index
    %c0_4 = arith.constant 0 : index
    %3 = vector.load %arg3[%c0_3, %c0_4] : memref<32x16xf32, #tpu.memory_space<vmem>>, vector<32x16xf32>
    %cst_5 = arith.constant dense<0.000000e+00> : vector<8x16xf32>
    %4 = tpu.matmul %0, %3, %cst_5 {dimension_numbers = #tpu.dot_dimension_numbers<[1], [0], [0], [1], [0, 0, 1, 1], [], []>} : vector<8x32xf32>, vector<32x16xf32>, vector<8x16xf32> -> vector<8x16xf32>
    %c0_6 = arith.constant 0 : index
    %c0_7 = arith.constant 0 : index
    %5 = vector.load %arg4[%c0_6, %c0_7] : memref<32x16xf32, #tpu.memory_space<vmem>>, vector<32x16xf32>
    %cst_8 = arith.constant dense<0.000000e+00> : vector<8x16xf32>
    %6 = tpu.matmul %0, %5, %cst_8 {dimension_numbers = #tpu.dot_dimension_numbers<[1], [0], [0], [1], [0, 0, 1, 1], [], []>} : vector<8x32xf32>, vector<32x16xf32>, vector<8x16xf32> -> vector<8x16xf32>
    %cst_9 = arith.constant dense<0.000000e+00> : vector<8x8xf32>
    %7 = tpu.matmul %2, %4, %cst_9 {dimension_numbers = #tpu.dot_dimension_numbers<[1], [1], [0], [0], [0, 0, 1, 0], [], []>} : vector<8x16xf32>, vector<8x16xf32>, vector<8x8xf32> -> vector<8x8xf32>
    %8 = tpu.iota {dimensions = array<i32: 0>} : vector<8x8xi32>
    %9 = tpu.iota {dimensions = array<i32: 1>} : vector<8x8xi32>
    %10 = arith.cmpi sle, %9, %8 : vector<8x8xi32>
    %cst_10 = arith.constant 0xFF800000 : f32
    %11 = vector.broadcast %cst_10 : f32 to vector<8x8xf32>
    %12 = arith.select %10, %7, %11 : vector<8x8xi1>, vector<8x8xf32>
    %cst_11 = arith.constant dense<0xFF800000> : vector<8xf32>
    %13 = vector.multi_reduction <maximumf>, %12, %cst_11 [1] : vector<8x8xf32> to vector<8xf32>
    %14 = vector.shape_cast %13 : vector<8xf32> to vector<8x1xf32>
    %15 = vector.broadcast %14 : vector<8x1xf32> to vector<8x8xf32>
    %16 = arith.subf %12, %15 : vector<8x8xf32>
    %17 = math.exp %16 : vector<8x8xf32>
    %cst_12 = arith.constant dense<0.000000e+00> : vector<8xf32>
    %18 = vector.multi_reduction <add>, %17, %cst_12 [1] : vector<8x8xf32> to vector<8xf32>
    %19 = vector.shape_cast %18 : vector<8xf32> to vector<8x1xf32>
    %20 = vector.broadcast %19 : vector<8x1xf32> to vector<8x8xf32>
    %21 = arith.divf %17, %20 : vector<8x8xf32>
    %cst_13 = arith.constant dense<0.000000e+00> : vector<8x16xf32>
    %22 = tpu.matmul %21, %6, %cst_13 {dimension_numbers = #tpu.dot_dimension_numbers<[1], [0], [0], [1], [0, 0, 1, 1], [], []>} : vector<8x8xf32>, vector<8x16xf32>, vector<8x16xf32> -> vector<8x16xf32>
    %c0_14 = arith.constant 0 : index
    %c0_15 = arith.constant 0 : index
    %23 = vector.load %arg5[%c0_14, %c0_15] : memref<8x16xf32, #tpu.memory_space<vmem>>, vector<8x16xf32>
    tpu.vector_store %arg5[%c0_14, %c0_15], %22 {strides = array<i32>} : memref<8x16xf32, #tpu.memory_space<vmem>>, vector<8x16xf32>,
    return
  }
  func.func @transform_0(%arg0: i32) -> (i32, i32) {
    %c0_i32 = arith.constant 0 : i32
    %c0_i32_0 = arith.constant 0 : i32
    return %arg0, %c0_i32 : i32, i32
  }
  func.func @transform_1(%arg0: i32) -> (i32, i32) {
    %c0_i32 = arith.constant 0 : i32
    %c0_i32_0 = arith.constant 0 : i32
    %c0_i32_1 = arith.constant 0 : i32
    return %c0_i32, %c0_i32_0 : i32, i32
  }
  func.func @transform_2(%arg0: i32) -> (i32, i32) {
    %c0_i32 = arith.constant 0 : i32
    %c0_i32_0 = arith.constant 0 : i32
    %c0_i32_1 = arith.constant 0 : i32
    return %c0_i32, %c0_i32_0 : i32, i32
  }
  func.func @transform_3(%arg0: i32) -> (i32, i32) {
    %c0_i32 = arith.constant 0 : i32
    %c0_i32_0 = arith.constant 0 : i32
    %c0_i32_1 = arith.constant 0 : i32
    return %c0_i32, %c0_i32_0 : i32, i32
  }
  func.func @transform_4(%arg0: i32) -> (i32, i32) {
    %c0_i32 = arith.constant 0 : i32
    %c0_i32_0 = arith.constant 0 : i32
    return %arg0, %c0_i32 : i32, i32
  }
}

</mosaic_0001>

<bundles_post_ra>
// kernel: tpu_custom_call.1
= control target key start
LH: loop header
LB: loop body
LE: loop exit
PB: predicated region body
PF: predicated region fallthrough
CT: control target
= control target key end

     0   :  { %9 = vsyncpa [#allocation3], 0  ;;  %s1024_s0 = inlined_call_operand.vmem [shape: f32[16,32], index: 0, kind: input, shape index: {}]   ;;  %s1025_s1 = inlined_call_operand.vmem [shape: f32[32,16], index: 1, kind: input, shape index: {}]   ;;  %s1026_s2 = inlined_call_operand.vmem [shape: f32[32,16], index: 2, kind: input, shape index: {}]   ;;  %s1027_s3 = inlined_call_operand.vmem [shape: f32[32,16], index: 3, kind: input, shape index: {}]   ;;  %s1028_s4 = inlined_call_operand.hbm [shape: f32[16,16], index: 4, kind: output, shape index: {}]  }
   0x1   :  { %11 = vsyncpa [#allocation3 + $0x1], 0  ;;  %s875_s15 = smov 0   ;;  %s877_s16 = smov 0  }
   0x2   :  { %s879_s17 = smov 0   ;;  %s881_s18 = smov 0  }
   0x3 LB: > { %s896_s19 = sadd.s32 4294967295, %s845_s18   ;;  %s662_s20 = sadd.s32 4294967294, %s845_s18   ;;  %s845_s18 = sphi %s881_s18, %s1034_s18   ;;  %s841_s17 = sphi %s879_s17, %s1033_s17   ;;  %s837_s16 = sphi %s877_s16, %s1032_s16   ;;  %s833_s15 = sphi %s875_s15, %s1031_s15  }
   0x4   : > { %s900_s21 = sadd.s32 1, %s845_s18   ;;  %s113_s22 = sadd.s32 1, %s841_s17 }
   0x5   : > { %s110_s23 = ssub.s32 %s845_s18, %s900_s21  ;;  %p123_p0 = scmp.ne.s32.totalorder %s841_s17, %s837_s16 }
   0x6   : > { %p111_p1 = scmp.eq.s32.totalorder %s110_s23, 0  ;;  %p124_p2 = scmp.eq.s32.totalorder %s896_s19, 1 }
   0x7   : > { %p129_p3 = scmp.ne.s32.totalorder %s837_s16, %s833_s15  ;;  %p130_p4 = scmp.eq.s32.totalorder %s662_s20, 1 }
   0x8   : > { %s911_s24 = scalar_select %p111_p1, %s841_s17, %s113_s22  }
   0x9   : > { %p913_p5 = por %p124_p2, %p123_p0  ;;  %p917_p6 = por %p130_p4, %p129_p3 }
   0xa   : > { %p665_p7 = scmp.ge.s32.totalorder %s845_s18, 1  ;;  %p164_p8 = scmp.lt.s32.totalorder %s845_s18, 3 }
   0xc   : > { %p165_p9 = pnand %p665_p7, %p164_p8 }
   0xd   : > { %p189_p10 = scmp.lt.s32.totalorder (!%p165_p9), %s896_s19, 1  ;;  %s186_s13 = sand.u32 (!%p165_p9), 1, %s837_s16  }
   0xe   : > { %168 = sbr.rel (%p165_p9) target bundleno = 937 (0x3a9), region = 36  ;;  %s675_s20 = sshll.u32 (!%p165_p9), %s896_s19, 7 }
   0xf   : > { %s982_s29 = scalar_lea.hbm (!%p165_p9), %s1028_s4, %s675_s20  ;;  %s590_s30 = scalar_lea.sflag (!%p165_p9), [#allocation3], %s186_s13 }
  0x13   : > { %v275_v0 = vld [vmem:[%s1026_s2 + $0x18] sm:$0xff]  ;;  %v847_v2 = vmov 0.0   ;;  %v274_v3 = vld [vmem:[%s1026_s2 + $0x10] sm:$0xff]  ;;  %s190_s9 = scalar_select %p189_p10, %s896_s19, 1  ;;  %v273_v5 = vld [vmem:[%s1026_s2 + $0x8] sm:$0xff]  ;;  %vm198_vm0 = vcmask 261120   ;;  %v497_v18 = vlaneseq }
  0x14   : > { %v197_v1 = vld [vmem:[%s1025_s1 + $0x18] sm:$0xff]  ;;  %708 = vmatprep.subr.mxu1 %v847_v2  ;;  %697 = vmatprep.subr.mxu0 %v847_v2  ;;  %v196_v4 = vld [vmem:[%s1025_s1 + $0x10] sm:$0xff]  ;;  %v195_v6 = vld [vmem:[%s1025_s1 + $0x8] sm:$0xff]  ;;  %vm848_vm1 = vmmov 0   ;;  %vm420_vm2 = vcmask 130048   ;;  %vm503_vm4 = vcmask 64512  }
  0x15   : > { %709 = vmatpush3.msra.mxu1 %v275_v0  ;;  %698 = vmatpush3.msra.mxu0 %v197_v1  ;;  %s667_s14 = sshll.u32 %s190_s9, 3  ;;  %v272_v7 = vld [vmem:[%s1026_s2] sm:$0xff]  ;;  %v349_v14 = vld [vmem:[%s1027_s3 + $0x18] sm:$0xff]  ;;  %v348_v15 = vld [vmem:[%s1027_s3 + $0x10] sm:$0xff]  ;;  %v498_v19 = vshrl.u32 %v497_v18, 7  ;;  %v500_v20 = vand.u32 127, %v497_v18 }
  0x16   : > { %710 = vmatprep.subr.mxu1 %v847_v2  ;;  %699 = vmatprep.subr.mxu0 %v847_v2  ;;  %s192_s28 = scalar_lea.vmem %s1024_s0, %s667_s14  ;;  %v194_v9 = vld [vmem:[%s1025_s1] sm:$0xff]  ;;  %v347_v16 = vld [vmem:[%s1027_s3 + $0x8] sm:$0xff]  ;;  %s666_s14 = sshll.u32 %s186_s13, 3 }
  0x17   : > { %711 = vmatpush3.msra.mxu1 %v274_v3  ;;  %700 = vmatpush3.msra.mxu0 %v196_v4  ;;  %v193_v8 = vld [vmem:[%s192_s28] sm:$0xff]  ;;  %vm501_vm3 = vcmp.le.s32.totalorder %v500_v20, %v498_v19  ;;  %s188_s22 = scalar_lea.vmem [#allocation2], %s666_s14  ;;  %s849_s19 = smov [#allocation2]  }
  0x18   : > { %712 = vmatprep.subr.mxu1 %v847_v2  ;;  %701 = vmatprep.subr.mxu0 %v847_v2  ;;  %v346_v17 = vld [vmem:[%s1027_s3] sm:$0xff]  ;;  %s603_s23 = sshll.u32 %s188_s22, 4  ;;  %s789_s6 = sshll.u32 %s849_s19, 4  ;;  %s984_s23 = int_to_ptr.vmem [resolvable:$true] %s603_s23  ;;  %s790_s6 = int_to_ptr.vmem [resolvable:$false] %s789_s6 }
  0x19   : > { %713 = vmatpush3.msra.mxu1 %v273_v5  ;;  %702 = vmatpush3.msra.mxu0 %v195_v6  ;;  %s785_s5 = scalar_lea.vmem %s984_s23, 128  ;;  %s791_s7 = scalar_lea.vmem %s790_s6, 256 }
  0x1a   : > { %714 = vmatprep.subr.mxu1 %v847_v2  ;;  %716 = vmatprep.mubr.msk.f32.mxu1 %vm848_vm1, %v847_v2  ;;  %p786_p11 = scmp.ne.s32.totalorder %s984_s23, %s785_s5  ;;  %p792_p0 = scmp.lt.s32.totalorder %s984_s23, %s790_s6 }
  0x1b   : > { %715 = vmatpush3.msra.mxu1 %v272_v7  ;;  %703 = vmatprep.subr.mxu0 %v847_v2  ;;  %p793_p1 = scmp.lt.s32.totalorder %s791_s7, %s785_s5 }
  0x1c   : > { %717 = vmatmul.mubr.msk.f32.vlgmr.msra.gmra.mxu1 %vm198_vm0, %v193_v8  ;;  %704 = vmatpush3.msra.mxu0 %v194_v9  ;;  %p787_p12 = pnand %p786_p11, %p913_p5 }
  0x1d   : > { %705 = vmatprep.mubr.msk.f32.mxu0 %vm848_vm1, %v847_v2  ;;  %730 = vmatprep.subr.mxu1 %v847_v2  ;;  %p794_p2 = por %p793_p1, %p792_p0 }
  0x1e   : > { %706 = vmatmul.mubr.msk.f32.vlgmr.msra.gmra.mxu0 %vm198_vm0, %v193_v8  ;;  %732 = vmatprep.mubr.msk.f32.mxu1 %vm848_vm1, %v847_v2  ;;  %p788_p13 = pneg %p787_p12 }
  0x1f   : > { %719 = vmatprep.subr.mxu0 %v847_v2  ;;  %727 = vmatprep.mubr.msk.f32.mxu0 %vm848_vm1, %v847_v2 }
  0x20   : > { %720 = vmatpush3.msra.mxu0 %v349_v14  ;;  %p795_p3 = pnand %p794_p2, %p788_p13 }
  0x21   : > { %721 = vmatprep.subr.mxu0 %v847_v2 }
  0x22   : > { %722 = vmatpush3.msra.mxu0 %v348_v15 }
  0x23   : > { %723 = vmatprep.subr.mxu0 %v847_v2 }
  0x24   : > { %724 = vmatpush3.msra.mxu0 %v347_v16 }
  0x25   : > { %725 = vmatprep.subr.mxu0 %v847_v2 }
  0x26   : > { %726 = vmatpush3.msra.mxu0 %v346_v17 }
  0x27   : > { %728 = vmatmul.mubr.msk.f32.vlgmr.msra.gmra.mxu0 %vm198_vm0, %v193_v8 }
  0xdc   : > { %v342_v10 = vpop.f32.mrf.mxu1 }
  0xdd   : > { %731 = vmatpush3.xpose.msk.msra.mxu1 %vm420_vm2, %v342_v10 }
  0xde   : > { %v268_v11 = vpop.f32.mrf.mxu0  ;;  %v718_v12 = vpop.f32.mrf.mxu1  ;;  %735 = vmatprep.subr.mxu1 %v847_v2 }
  0xe0   : > { %v707_v13 = vpop.f32.mrf.mxu0  ;;  %733 = vmatmul.mubr.msk.f32.vlgmr.msra.gmra.mxu1 %vm420_vm2, %v268_v11 }
  0xe1   : > { %737 = vmatprep.mubr.msk.f32.mxu1 %vm848_vm1, %v847_v2 }
  0xe7   : > { %v416_v30 = vpop.f32.mrf.mxu0 }
  0xe8   : > { %736 = vmatpush3.msra.mxu1 %v416_v30 }
  0xe9   : > { %v729_v31 = vpop.f32.mrf.mxu0 }
 0x1a0   : > { %v493_v21 = vpop.f32.mrf.mxu1 }
 0x1a1   : > { %v502_v22 = vsel %vm501_vm3, %v493_v21, -inf }
 0x1a2   : > { %v734_v23 = vpop.f32.mrf.mxu1  ;;  %v504_v24 = vsel %vm503_vm4, %v502_v22, -inf }
 0x1a3   : > { %505 = vmax.xlane.f32.xlu0 %v504_v24 }
 0x22c   : > { %v506_v25 = vpop.xlane.xlu0 %505 }
 0x22d   : > { %v507_v26 = vsub.f32 %v502_v22, %v506_v25 }
 0x22f   : > { %v508_v27 = vmul.f32 1.442695, %v507_v26 }
 0x231   : > { %781 = vpow2.f32 %v508_v27 }
 0x23e   : > { %v782_v28 = vpop.eup %781 }
 0x23f   : > { %v510_v29 = vsel %vm503_vm4, %v782_v28, 0.0 }
 0x240   : > { %511 = vadd.xlane.f32.xlu0 %v510_v29 }
 0x2c9   : > { %v512_v32 = vpop.xlane.xlu0 %511 }
 0x2ca   : > { %783 = vrcp.f32 %v512_v32 }
 0x2d7   : > { %v784_v33 = vpop.eup %783 }
 0x2d8   : > { %v514_v34 = vmul.f32 %v784_v33, %v782_v28 }
 0x2da   : > { %738 = vmatmul.mubr.msk.f32.vlgmr.msra.gmra.mxu1 %vm503_vm4, %v514_v34 }
 0x39a   : > { %v584_v35 = vpop.f32.mrf.mxu1 }
 0x39b   : > { %588 = vst.msk [vmem:[%s188_s22] sm:$0xff] %vm420_vm2, %v584_v35 }
 0x39c   : > { %v739_v36 = vpop.f32.mrf.mxu1 }
 0x39d   : > { %798 = shalt.err (!%p795_p3)
}
 0x39e   : > { %s799_s8 = scalar_lea.hbm %s982_s29, 128  ;;  %s803_s11 = scalar_lea.hbm %s1028_s4, 256 }
 0x39f   : > { %p800_p4 = scmp.ne.s32.totalorder %s982_s29, %s799_s8  ;;  %p804_p9 = scmp.lt.s32.totalorder %s982_s29, %s1028_s4 }
 0x3a0   : > { %p805_p10 = scmp.lt.s32.totalorder %s803_s11, %s799_s8 }
 0x3a1   : > { %p801_p7 = pnand %p800_p4, %p913_p5 }
 0x3a2   : > { %p806_p11 = por %p805_p10, %p804_p9 }
 0x3a3   : > { %p802_p8 = pneg %p801_p7 }
 0x3a5   : > { %p807_p12 = pnand %p806_p11, %p802_p8 }
 0x3a7   : > { %810 = shalt.err (!%p807_p12)
}
 0x3a8   : > { %740 = dma.vmem_to_hbm [thread:$0]  (%p913_p5), %s984_s23, 128, %s982_s29, %s590_s30  }
 0x3a9 PF: > { %p746_p13 = scmp.ge.s32.totalorder %s845_s18, 2  ;;  %s615_s14 = sand.u32 1, %s833_s15  }
 0x3aa   : > { %s616_s20 = scalar_lea.sflag [#allocation3], %s615_s14 }
 0x3ab   : > { %p743_p0 = pnand %p746_p13, %p917_p6 }
 0x3ad   : > { %p744_p1 = pneg %p743_p0 }
 0x3af   : > { %828 = dma.done.wait (%p744_p1), %s616_s20, 128  }
 0x3b0   : > { %830 = vsyncadd (%p744_p1), %s616_s20, 4294967168  ;;  %p14_p2 = scmp.ge.s32.totalorder %s900_s21, 4   ;;  %s1031_s15 = smov %s837_s16 }
 0x3b1   : > { %s1032_s16 = smov %s841_s17  ;;  %s1033_s17 = smov %s911_s24 }
 0x3b2   : > { %s1034_s18 = smov %s900_s21  ;;  %16 = sbr.rel (!%p14_p2) target bundleno = 3 (0x3), region = 71 }
 0x3b7   :  { %621 = vsyncpa [#allocation3], 1 }
 0x3b8   :  { %623 = vsyncpa [#allocation3 + $0x1], 1 }

</bundles_post_ra>
